<compile_context>
chip_gen: v7x
topology: tpu7x:2x2x1
jax: 0.10.0
libtpu: 0.0.40
codegen_flags: <defaults>
</compile_context>

<pallas_src>
import functools

import jax
import jax.numpy as jnp
from jax.experimental import pallas as pl
from jax.experimental.pallas import tpu as pltpu


def _round_up(x, m):
    return (x + m - 1) // m * m


def _vmem_capacity_bytes():
    try:
        info = pltpu.get_tpu_info()
        cap = getattr(info, "vmem_capacity_bytes", None)
        if cap:
            return int(cap)
    except Exception:
        pass
    return 64 * 1024 * 1024                       # conservative (v7x-sized) default


_VMEM_CAP = _vmem_capacity_bytes()
_BIG_VMEM = _VMEM_CAP >= 100 * 1024 * 1024        # v5e/v6e (128 MiB) vs v7x (64 MiB)
_TM_CAP = 1024 if _BIG_VMEM else 512
_B_RESIDENT_BYTES = (6 if _BIG_VMEM else 4) * 1024 * 1024


def _vmem_limit(footprint_bytes):
    return int(min(max(32 * 1024 * 1024, 2 * footprint_bytes),
                   int(0.8 * _VMEM_CAP)))


# --------------------------------------------------------------------------
# Matmul kernel with fused bias (+residual) (+ReLU) epilogue (f32 epilogue)
# --------------------------------------------------------------------------

def _mm_kernel(relu, residual):
    if residual:
        def kernel(a_ref, b_ref, s_ref, r_ref, o_ref):
            acc = jnp.dot(a_ref[...], b_ref[...],
                          preferred_element_type=jnp.float32)
            y = acc + s_ref[...] + r_ref[...].astype(jnp.float32)
            if relu:
                y = jnp.maximum(y, 0.0)
            o_ref[...] = y.astype(o_ref.dtype)
    else:
        def kernel(a_ref, b_ref, s_ref, o_ref):
            acc = jnp.dot(a_ref[...], b_ref[...],
                          preferred_element_type=jnp.float32)
            y = acc + s_ref[...]
            if relu:
                y = jnp.maximum(y, 0.0)
            o_ref[...] = y.astype(o_ref.dtype)
    return kernel


@functools.lru_cache(maxsize=None)
def _make_matmul(Mp, Kp, Np, tm, tn, relu, residual, b_resident):
    if b_resident:
        tn = Np
        grid = (Mp // tm,)
        a_spec = pl.BlockSpec((tm, Kp), lambda i: (i, 0))
        b_spec = pl.BlockSpec((Kp, Np), lambda i: (0, 0))      # weights DMA'd once
        s_spec = pl.BlockSpec((1, Np), lambda i: (0, 0))
        r_spec = pl.BlockSpec((tm, Np), lambda i: (i, 0))
        o_spec = pl.BlockSpec((tm, Np), lambda i: (i, 0))
        sem = ("parallel",)
        b_reads = 1
    else:
        grid = (Mp // tm, Np // tn)
        a_spec = pl.BlockSpec((tm, Kp), lambda i, j: (i, 0))   # K-resident row panel
        b_spec = pl.BlockSpec((Kp, tn), lambda i, j: (0, j))
        s_spec = pl.BlockSpec((1, tn), lambda i, j: (0, j))
        r_spec = pl.BlockSpec((tm, tn), lambda i, j: (i, j))
        o_spec = pl.BlockSpec((tm, tn), lambda i, j: (i, j))
        sem = ("parallel", "parallel")
        b_reads = Mp // tm
    in_specs = [a_spec, b_spec, s_spec] + ([r_spec] if residual else [])
    foot = 2 * (tm * Kp * 2 + Kp * tn * 2 + tm * tn * 2 + tn * 4
                + (tm * tn * 2 if residual else 0)) + tm * tn * 4
    bytes_accessed = (2 * Mp * Kp + 2 * Kp * Np * b_reads
                      + 2 * Mp * Np * (2 if residual else 1) + 4 * Np)
    fn = pl.pallas_call(
        _mm_kernel(relu, residual),
        out_shape=jax.ShapeDtypeStruct((Mp, Np), jnp.bfloat16),
        grid_spec=pltpu.PrefetchScalarGridSpec(
            num_scalar_prefetch=0, grid=grid,
            in_specs=in_specs, out_specs=o_spec),
        compiler_params=pltpu.CompilerParams(
            dimension_semantics=sem,
            vmem_limit_bytes=_vmem_limit(foot)),
        cost_estimate=pl.CostEstimate(
            flops=2 * Mp * Kp * Np, transcendentals=0,
            bytes_accessed=bytes_accessed),
    )
    return jax.jit(fn)


def matmul_bn(a, w_pad, bias_pad, relu, residual=None):
    """(M,K)@(Kp,Np) with BN folded into w_pad; bias/residual/ReLU fused."""
    M, K = a.shape
    Kp, Np = w_pad.shape
    assert K == Kp, (K, Kp)
    Mp = _round_up(M, 8)
    if Mp <= _TM_CAP:
        tm = Mp
    else:
        tm = None
        for cand in range(_TM_CAP, _TM_CAP // 2 - 1, -8):
            if Mp % cand == 0:
                tm = cand
                break
        if tm is None:                       # rare ragged case: pad rows minimally
            tm = _TM_CAP
            Mp = _round_up(M, tm)
    if Mp != M:
        a = jnp.pad(a, ((0, Mp - M), (0, 0)))
        if residual is not None:
            residual = jnp.pad(residual, ((0, Mp - M), (0, 0)))
    rows = Mp // tm
    resident = rows >= 2 and (Kp * Np * 2) <= _B_RESIDENT_BYTES
    if resident:
        tn = Np
    else:
        tn = min(256, Np)
        if rows == 1 and Np >= 256 and Np // tn < 2:
            tn = 128                         # >=2 lane tiles so both v7x cores work
    args = [a.astype(jnp.bfloat16), w_pad, bias_pad]
    if residual is not None:
        args.append(residual.astype(jnp.bfloat16))
    out = _make_matmul(Mp, Kp, Np, tm, tn, bool(relu),
                       residual is not None, resident)(*args)
    if Mp != M:
        out = out[:M]
    return out


# --------------------------------------------------------------------------
# In-kernel tap gather for 3x3 stride-1 convs (no HBM im2col)
# --------------------------------------------------------------------------

@functools.lru_cache(maxsize=None)
def _make_conv3x3_s1(n, mi, mw, c, npad, tn, wp, relu):
    offs = tuple(dy * wp + dx for dy in range(3) for dx in range(3))

    def kernel(x_ref, w_ref, s_ref, o_ref):
        # x_ref: (1, mi, c) padded+flattened image; 9 taps are row-shifted views.
        acc = jnp.zeros((mw, tn), jnp.float32)
        for t, off in enumerate(offs):
            a = x_ref[0, off:off + mw, :]
            wt = w_ref[t * c:(t + 1) * c, :]
            acc = acc + jnp.dot(a, wt, preferred_element_type=jnp.float32)
        y = acc + s_ref[...]
        if relu:
            y = jnp.maximum(y, 0.0)
        o_ref[0] = y.astype(o_ref.dtype)

    foot = 2 * (mi * c * 2 + 9 * c * tn * 2 + mw * tn * 2 + tn * 4) + 2 * mw * tn * 4
    fn = pl.pallas_call(
        kernel,
        out_shape=jax.ShapeDtypeStruct((n, mw, npad), jnp.bfloat16),
        grid_spec=pltpu.PrefetchScalarGridSpec(
            num_scalar_prefetch=0,
            grid=(npad // tn, n),                      # weights outer -> DMA'd once
            in_specs=[pl.BlockSpec((1, mi, c), lambda j, i: (i, 0, 0)),
                      pl.BlockSpec((9 * c, tn), lambda j, i: (0, j)),
                      pl.BlockSpec((1, tn), lambda j, i: (0, j))],
            out_specs=pl.BlockSpec((1, mw, tn), lambda j, i: (i, 0, j)),
        ),
        compiler_params=pltpu.CompilerParams(
            dimension_semantics=("parallel", "parallel"),
            vmem_limit_bytes=_vmem_limit(foot)),
        cost_estimate=pl.CostEstimate(
            flops=2 * n * mw * 9 * c * npad, transcendentals=0,
            bytes_accessed=2 * (n * mi * c + 9 * c * npad + n * mw * npad)),
    )
    return jax.jit(fn)


def _conv3x3_s1_tap(x, p, relu):
    n, h, w, c = x.shape
    wp = w + 2
    mw = _round_up(h * wp, 8)                 # "wide" output rows (2 junk cols/row)
    mi = _round_up(mw + 2 * wp + 2, 8)
    xpad = jnp.pad(x, ((0, 0), (1, 1), (1, 1), (0, 0)))
    xf = xpad.reshape(n, (h + 2) * wp, c)
    xf = jnp.pad(xf, ((0, 0), (0, mi - (h + 2) * wp), (0, 0)))
    kw, npad = p["w"].shape
    assert kw == 9 * c
    tn = min(256, npad)
    if npad >= 256 and npad // tn < 2:
        tn = 128
    y = _make_conv3x3_s1(n, mi, mw, c, npad, tn, wp, bool(relu))(xf, p["w"], p["bias"])
    # TODO(synk): the valid-column extraction below is one output-sized HBM pass;
    # it could be folded into the consumer's row selection.
    y = y[:, :h * wp, :].reshape(n, h, wp, npad)[:, :, :w, :]
    return y


# --------------------------------------------------------------------------
# im2col fallback path (used for the 7x7 stem and the 3 stride-2 3x3 convs)
# --------------------------------------------------------------------------

def _im2col(x, ksize, stride, pad, k_target):
    n, h, w, c = x.shape
    if ksize == 1:
        if stride > 1:
            x = x[:, ::stride, ::stride, :]
        _, ho, wo, _ = x.shape
        return x.reshape(n * ho * wo, c), (n, ho, wo)
    if pad:
        x = jnp.pad(x, ((0, 0), (pad, pad), (pad, pad), (0, 0)))
    ho = (h + 2 * pad - ksize) // stride + 1
    wo = (w + 2 * pad - ksize) // stride + 1
    cols = [x[:, i:i + stride * ho:stride, j:j + stride * wo:stride, :]
            for i in range(ksize) for j in range(ksize)]
    if k_target > ksize * ksize * c:          # fold K padding into the concat
        cols.append(jnp.zeros((n, ho, wo, k_target - ksize * ksize * c), x.dtype))
    cols = jnp.concatenate(cols, axis=-1)
    return cols.reshape(n * ho * wo, k_target), (n, ho, wo)


def _conv_im2col_bn(x, p, ksize, stride, pad, relu, residual=None):
    cols, (n, ho, wo) = _im2col(x, ksize, stride, pad, p["w"].shape[0])
    if residual is not None:
        residual = residual.reshape(n * ho * wo, -1)
    y = matmul_bn(cols, p["w"], p["bias"], relu, residual)
    return y.reshape(n, ho, wo, p["w"].shape[1])


_TAP3X3_OK = None


def _tap3x3_ok():
    """One-time compile + numeric check of the tap kernel; fall back if needed."""
    global _TAP3X3_OK
    if _TAP3X3_OK is None:
        try:
            p = _make_conv_bn_params(jax.random.PRNGKey(123), 128, 128, 3)
            x = jax.random.normal(jax.random.PRNGKey(7), (1, 8, 8, 128),
                                  jnp.float32).astype(jnp.bfloat16)
            y_tap = _conv3x3_s1_tap(x, p, relu=True).astype(jnp.float32)
            y_ref = _conv_im2col_bn(x, p, 3, 1, 1, relu=True).astype(jnp.float32)
            jax.block_until_ready((y_tap, y_ref))
            _TAP3X3_OK = bool(jnp.allclose(y_tap, y_ref, rtol=2e-2, atol=2e-2))
        except Exception:
            _TAP3X3_OK = False
    return _TAP3X3_OK


def conv_bn(x, p, ksize, stride, pad, relu, residual=None):
    if ksize == 3 and stride == 1 and residual is None and _tap3x3_ok():
        return _conv3x3_s1_tap(x, p, relu)
    return _conv_im2col_bn(x, p, ksize, stride, pad, relu, residual)


# --------------------------------------------------------------------------
# Pooling kernels
# --------------------------------------------------------------------------

@functools.lru_cache(maxsize=None)
def _make_maxpool(n, ho, wo, c):
    def kernel(x_ref, o_ref):
        x = x_ref[0]                                    # (ho+1, 2, wo+1, 2c)
        r = jnp.maximum(jnp.maximum(x[0:ho, 0], x[0:ho, 1]), x[1:ho + 1, 0])
        lo = r[:, :, 0:c]                               # original even columns
        hi = r[:, 0:wo, c:2 * c]                        # original odd columns
        m = jnp.maximum(lo[:, 0:wo, :], lo[:, 1:wo + 1, :])
        o_ref[0] = jnp.maximum(m, hi)

    return jax.jit(pl.pallas_call(
        kernel,
        out_shape=jax.ShapeDtypeStruct((n, ho, wo, c), jnp.bfloat16),
        grid_spec=pltpu.PrefetchScalarGridSpec(
            num_scalar_prefetch=0, grid=(n,),
            in_specs=[pl.BlockSpec((1, ho + 1, 2, wo + 1, 2 * c),
                                   lambda i: (i, 0, 0, 0, 0))],
            out_specs=pl.BlockSpec((1, ho, wo, c), lambda i: (i, 0, 0, 0)),
        ),
        compiler_params=pltpu.CompilerParams(
            dimension_semantics=("parallel",)),
    ))


def maxpool_3x3_s2(x):
    # TODO(synk): tile H inside the grid for large (224x224-class) inputs.
    n, h, w, c = x.shape
    ho = (h - 1) // 2 + 1
    wo = (w - 1) // 2 + 1
    xp = jnp.pad(x, ((0, 0), (1, 2 * ho + 1 - h), (1, 2 * wo + 1 - w), (0, 0)),
                 constant_values=-jnp.inf)
    xp = xp.reshape(n, ho + 1, 2, wo + 1, 2 * c)
    return _make_maxpool(n, ho, wo, c)(xp)


@functools.lru_cache(maxsize=None)
def _make_avgpool(n, hw, c):
    inv = 1.0 / hw

    def kernel(x_ref, o_ref):
        o_ref[...] = jnp.sum(x_ref[...].astype(jnp.float32), axis=1) * inv

    return jax.jit(pl.pallas_call(
        kernel,
        out_shape=jax.ShapeDtypeStruct((n, c), jnp.float32),
        grid_spec=pltpu.PrefetchScalarGridSpec(
            num_scalar_prefetch=0, grid=(1,),               # whole batch in one step
            in_specs=[pl.BlockSpec((n, hw, c), lambda i: (0, 0, 0))],
            out_specs=pl.BlockSpec((n, c), lambda i: (0, 0)),
        ),
        compiler_params=pltpu.CompilerParams(
            dimension_semantics=("arbitrary",)),
    ))


# --------------------------------------------------------------------------
# Deterministic synthetic parameters (torchvision resnet50 shapes), with BN
# folded into the weights and channel/K padding done once at build time.
# --------------------------------------------------------------------------

def _make_conv_bn_params(key, cin, cout, ksize, cin_store=None):
    if cin_store is None:
        cin_store = _round_up(cin, 128)
    k1, k2, k3, k4, k5 = jax.random.split(key, 5)
    fan_in = ksize * ksize * cin
    w = jax.random.normal(k1, (ksize * ksize, cin, cout),
                          jnp.float32) * jnp.sqrt(2.0 / fan_in)
    gamma = 1.0 + 0.1 * jax.random.normal(k2, (cout,))
    beta = 0.1 * jax.random.normal(k3, (cout,))
    mean = 0.1 * jax.random.normal(k4, (cout,))
    var = 1.0 + 0.1 * jax.random.uniform(k5, (cout,))
    scale = gamma / jnp.sqrt(var + 1e-5)                     # folded inference BN
    bias = beta - mean * scale
    w = w * scale[None, None, :]
    cout_p = _round_up(cout, 128)
    # pad cin -> storage channels per tap, cout -> multiple of 128 (zero columns)
    w = jnp.pad(w, ((0, 0), (0, cin_store - cin), (0, cout_p - cout)))
    K = ksize * ksize * cin_store
    Kp = _round_up(K, 128)
    w = w.reshape(K, cout_p)
    if Kp > K:
        w = jnp.pad(w, ((0, Kp - K), (0, 0)))
    b = jnp.pad(bias.reshape(1, -1), ((0, 0), (0, cout_p - cout))).astype(jnp.float32)
    return {"w": w.astype(jnp.bfloat16), "bias": b}


def _make_bottleneck_params(key, cin, planes, has_down):
    ks = jax.random.split(key, 4)
    p = {"c1": _make_conv_bn_params(ks[0], cin, planes, 1),
         "c2": _make_conv_bn_params(ks[1], planes, planes, 3),
         "c3": _make_conv_bn_params(ks[2], planes, planes * 4, 1)}
    if has_down:
        p["down"] = _make_conv_bn_params(ks[3], cin, planes * 4, 1)
    return p


def make_resnet50_params(key):
    keys = jax.random.split(key, 5)
    params = {"stem": _make_conv_bn_params(keys[0], 3, 64, 7, cin_store=4),
              "layers": []}
    cin = 64
    for li, (planes, nblocks) in enumerate([(64, 3), (128, 4), (256, 6), (512, 3)]):
        blocks = []
        for b in range(nblocks):
            bkey = jax.random.fold_in(keys[li + 1], b)
            blocks.append(_make_bottleneck_params(bkey, cin, planes, b == 0))
            cin = planes * 4
        params["layers"].append(blocks)
    return params


# --------------------------------------------------------------------------
# Forward pass (equivalent of ResNetBackBone.forward, eval / no-grad)
# --------------------------------------------------------------------------

def bottleneck(x, p, stride):
    out = conv_bn(x, p["c1"], 1, 1, 0, relu=True)
    out = conv_bn(out, p["c2"], 3, stride, 1, relu=True)
    if "down" in p:
        identity = conv_bn(x, p["down"], 1, stride, 0, relu=False)
    else:
        identity = x
    # residual add + ReLU fused into the c3 matmul epilogue
    return conv_bn(out, p["c3"], 1, 1, 0, relu=True, residual=identity)


def resnet50_backbone(x_nchw, params):
    x = jnp.transpose(x_nchw, (0, 2, 3, 1))                         # NCHW -> NHWC
    x = jnp.pad(x, ((0, 0), (0, 0), (0, 0), (0, 1))).astype(jnp.bfloat16)  # C 3->4
    x = conv_bn(x, params["stem"], 7, 2, 3, relu=True)              # conv1+bn1+relu
    x = maxpool_3x3_s2(x)                                           # maxpool
    layer_strides = [1, 2, 2, 2]
    for li, blocks in enumerate(params["layers"]):
        for bi, bp in enumerate(blocks):
            s = layer_strides[li] if bi == 0 else 1
            x = bottleneck(x, bp, s)
    n, h, w, c = x.shape
    feats = _make_avgpool(n, h * w, c)(x.reshape(n, h * w, c))      # avgpool(1,1)
    return feats                                                    # (N, 2048)


if __name__ == "__main__":
    params = make_resnet50_params(jax.random.PRNGKey(42))
    x = jax.random.normal(jax.random.PRNGKey(0), (2, 3, 64, 64), jnp.float32)  # NCHW
    feats = resnet50_backbone(x, params)
    feats = jax.block_until_ready(feats)
    assert feats.shape == (2, 2048), feats.shape
    assert bool(jnp.all(jnp.isfinite(feats)))
    print("KERNEL_OK")
</pallas_src>

<mosaic_0001>
module attributes {stable_mosaic.version = 11 : i64} {
  func.func @kernel(%arg0: i32, %arg1: memref<512x256xbf16, #tpu.memory_space<vmem>>, %arg2: memref<256x128xbf16, #tpu.memory_space<vmem>>, %arg3: memref<1x128xf32, #tpu.memory_space<vmem>>, %arg4: memref<512x128xbf16, #tpu.memory_space<vmem>>) attributes {dimension_semantics = [#tpu.dimension_semantics<parallel>], iteration_bounds = array<i64: 4>, scalar_prefetch = 0 : i64, scratch_operands = 0 : i64, tpu.core_type = #tpu.core_type<tc>, window_params = [{transform_indices = @transform_0, window_bounds = array<i64: 512, 256>}, {pipeline_mode = #tpu.pipeline_mode<synchronous>, transform_indices = @transform_1, window_bounds = array<i64: 256, 128>}, {pipeline_mode = #tpu.pipeline_mode<synchronous>, transform_indices = @transform_2, window_bounds = array<i64: 1, 128>}, {transform_indices = @transform_3, window_bounds = array<i64: 512, 128>}]} {
    %c0 = arith.constant 0 : index
    %c0_0 = arith.constant 0 : index
    %0 = vector.load %arg1[%c0, %c0_0] : memref<512x256xbf16, #tpu.memory_space<vmem>>, vector<512x256xbf16>
    %c0_1 = arith.constant 0 : index
    %c0_2 = arith.constant 0 : index
    %1 = vector.load %arg2[%c0_1, %c0_2] : memref<256x128xbf16, #tpu.memory_space<vmem>>, vector<256x128xbf16>
    %cst = arith.constant dense<0.000000e+00> : vector<512x128xf32>
    %2 = tpu.matmul %0, %1, %cst {dimension_numbers = #tpu.dot_dimension_numbers<[1], [0], [0], [1], [0, 0, 1, 1], [], []>} : vector<512x256xbf16>, vector<256x128xbf16>, vector<512x128xf32> -> vector<512x128xf32>
    %c0_3 = arith.constant 0 : index
    %c0_4 = arith.constant 0 : index
    %3 = vector.load %arg3[%c0_3, %c0_4] : memref<1x128xf32, #tpu.memory_space<vmem>>, vector<1x128xf32>
    %4 = vector.broadcast %3 : vector<1x128xf32> to vector<512x128xf32>
    %5 = arith.addf %2, %4 : vector<512x128xf32>
    %cst_5 = arith.constant 0.000000e+00 : f32
    %6 = vector.broadcast %cst_5 : f32 to vector<512x128xf32>
    %7 = arith.maximumf %5, %6 : vector<512x128xf32>
    %8 = arith.truncf %7 : vector<512x128xf32> to vector<512x128xbf16>
    %c0_6 = arith.constant 0 : index
    %c0_7 = arith.constant 0 : index
    %9 = vector.load %arg4[%c0_6, %c0_7] : memref<512x128xbf16, #tpu.memory_space<vmem>>, vector<512x128xbf16>
    tpu.vector_store %arg4[%c0_6, %c0_7], %8 {strides = array<i32>} : memref<512x128xbf16, #tpu.memory_space<vmem>>, vector<512x128xbf16>,
    return
  }
  func.func @transform_0(%arg0: i32) -> (i32, i32) {
    %c0_i32 = arith.constant 0 : i32
    %c0_i32_0 = arith.constant 0 : i32
    return %arg0, %c0_i32 : i32, i32
  }
  func.func @transform_1(%arg0: i32) -> (i32, i32) {
    %c0_i32 = arith.constant 0 : i32
    %c0_i32_0 = arith.constant 0 : i32
    %c0_i32_1 = arith.constant 0 : i32
    return %c0_i32, %c0_i32_0 : i32, i32
  }
  func.func @transform_2(%arg0: i32) -> (i32, i32) {
    %c0_i32 = arith.constant 0 : i32
    %c0_i32_0 = arith.constant 0 : i32
    %c0_i32_1 = arith.constant 0 : i32
    return %c0_i32, %c0_i32_0 : i32, i32
  }
  func.func @transform_3(%arg0: i32) -> (i32, i32) {
    %c0_i32 = arith.constant 0 : i32
    %c0_i32_0 = arith.constant 0 : i32
    return %arg0, %c0_i32 : i32, i32
  }
}

</mosaic_0001>

<bundles_post_ra>
// kernel: tpu_custom_call.1
= control target key start
LH: loop header
LB: loop body
LE: loop exit
PB: predicated region body
PF: predicated region fallthrough
CT: control target
= control target key end

     0   :  { %8 = vsyncpa [#allocation3], 0  ;;  %s2680_s0 = inlined_call_operand.hbm [shape: bf16[2048,256], index: 0, kind: input, shape index: {}]   ;;  %s2681_s1 = inlined_call_operand.hbm [shape: bf16[256,128], index: 1, kind: input, shape index: {}]   ;;  %s2682_s2 = inlined_call_operand.vmem [shape: f32[1,128], index: 2, kind: input, shape index: {}]   ;;  %s2683_s3 = inlined_call_operand.hbm [shape: bf16[2048,128], index: 3, kind: output, shape index: {}]  }
   0x1   :  { %10 = vsyncpa [#allocation3 + $0x1], 0 }
   0x2   :  { %11 = vsyncpa [#allocation6], 0 }
   0x3   :  { %12 = vsyncpa [#allocation4], 0 }
   0x4   :  { %14 = vsyncpa [#allocation4 + $0x1], 0  ;;  %s2285_s12 = smov 0   ;;  %s2287_s13 = smov 0  }
   0x5   :  { %s2289_s14 = smov 0   ;;  %s2291_s15 = smov 0  }
   0x6 LB: > { %s2306_s16 = sadd.s32 4294967295, %s2253_s15   ;;  %s1497_s17 = sadd.s32 4294967294, %s2253_s15   ;;  %s2253_s15 = sphi %s2291_s15, %s2702_s15   ;;  %s2249_s14 = sphi %s2289_s14, %s2701_s14   ;;  %s2245_s13 = sphi %s2287_s13, %s2700_s13   ;;  %s2241_s12 = sphi %s2285_s12, %s2699_s12  }
   0x7   : > { %p40_p0 = scmp.ne.s32.totalorder %s2245_s13, %s2241_s12  ;;  %p2684_p1 = scmp.eq.s32.totalorder %s2306_s16, 0 }
   0x8   : > { %p112_p3 = scmp.eq.s32.totalorder %s1497_s17, 3  ;;  %p1498_p5 = scmp.ge.s32.totalorder %s2253_s15, 1 }
   0x9   : > { %p2315_p4 = por %p2684_p1, %p40_p0  ;;  %p119_p7 = scmp.lt.s32.totalorder %s2253_s15, 5 }
   0xa   : > { %p2320_p6 = por %p112_p3, %p40_p0  ;;  %s2255_s21 = smov [#allocation5]  }
   0xb   : > { %s2687_s18 = scalar_select %p2315_p4, 1, 0 }
   0xc   : > { %s2688_s19 = scalar_select %p2320_p6, 1, 0 }
   0xd   : > { %p2325_p8 = pnand %p1498_p5, %p119_p7  ;;  %s131_s22 = sshll.u32 %s2255_s21, 4  ;;  %s132_s22 = int_to_ptr.vmem [resolvable:$true] %s131_s22 }
   0xe   : > { %s2338_s24 = sadd.s32 1, %s2253_s15   ;;  %s27_s25 = sadd.s32 1, %s2249_s14 }
   0xf   : > { %s2689_s20 = scalar_select %p2325_p8, 1, 0 }
  0x10   : > { %p1957_p9 = pneg %p2325_p8  ;;  %s24_s26 = ssub.s32 %s2253_s15, %s2338_s24 }
  0x11   : > { %s2125_s29 = scalar_lea.hbm %s2681_s1, 2048 }
  0x12   : > { %p2333_p10 = pnand %p1957_p9, %p2684_p1  ;;  %p2126_p11 = scmp.ne.s32.totalorder %s2681_s1, %s2125_s29 }
  0x13   : > { %p2132_p3 = scmp.lt.u32.totalorder %s2125_s29, %s2681_s1 }
  0x14   : > { %p2127_p12 = pneg %p2333_p10 }
  0x16   : > { %p2128_p13 = pnand %p2127_p12, %p2126_p11 }
  0x18   : > { %p2129_p0 = pneg %p2128_p13 }
  0x1a   : > { %p2134_p5 = pnand %p2132_p3, %p2129_p0 }
  0x1c   : > { %2137 = shalt.err (!%p2134_p5)
}
  0x1d   : > { %s2138_s7 = scalar_lea.vmem %s132_s22, 2048  ;;  %p2146_p2 = scmp.lt.s32.totalorder %s132_s22, %s132_s22 }
  0x1e   : > { %p2139_p7 = scmp.ne.s32.totalorder %s132_s22, %s2138_s7  ;;  %p2147_p6 = scmp.lt.s32.totalorder %s2138_s7, %s2138_s7 }
  0x20   : > { %p2141_p9 = pnand %p2139_p7, %p2127_p12  ;;  %p2148_p4 = por %p2147_p6, %p2146_p2 }
  0x22   : > { %p2142_p1 = pneg %p2141_p9 }
  0x24   : > { %p2149_p8 = pnand %p2148_p4, %p2142_p1 }
  0x26   : > { %2152 = shalt.err (!%p2149_p8)
}
  0x27   : > { %s2256_s8 = smov 64   ;;  %s2257_s9 = smov 4  }
  0x28   : > { %1960 = dma.hbm_to_vmem [thread:$0]  (!%p2333_p10), %s2681_s1, 2048, %s132_s22, [#allocation6], %s2256_s8, %s2256_s8, %s2257_s9  }
  0x29   : > { %p25_p11 = scmp.eq.s32.totalorder %s24_s26, 0  ;;  %p34_p2 = scmp.ne.s32.totalorder %s2249_s14, %s2245_s13 }
  0x2a   : > { %p35_p1 = scmp.eq.s32.totalorder %s2253_s15, 0  ;;  %p1970_p4 = scmp.lt.s32.totalorder %s2253_s15, 4 }
  0x2b   : > { %s2364_s17 = scalar_select %p25_p11, %s2249_s14, %s27_s25  }
  0x2c   : > { %p36_p6 = por %p35_p1, %p34_p2  ;;  %p2691_p8 = scmp.eq.s32.totalorder %s2306_s16, 3 }
  0x2d   : > { %s148_s27 = sand.u32 1, %s2249_s14   ;;  %s1660_s28 = sshll.u32 %s2253_s15, 13 }
  0x2e   : > { %p2368_p12 = por %p2691_p8, %p34_p2  ;;  %s1501_s29 = sshll.u32 %s148_s27, 9 }
  0x2f   : > { %s2377_s4 = scalar_lea.hbm %s2680_s0, %s1660_s28  ;;  %s152_s22 = scalar_lea.vmem [#allocation2], %s1501_s29 }
  0x30   : > { %s160_s25 = sshll.u32 %s152_s22, 4  ;;  %p2379_p10 = pnand %p1970_p4, %p36_p6  ;;  %s2383_s25 = int_to_ptr.vmem [resolvable:$true] %s160_s25 }
  0x31   : > { %s2385_s5 = scalar_lea.sflag [#allocation3], %s148_s27  ;;  %s2153_s6 = scalar_lea.hbm %s2377_s4, 8192 }
  0x32   : > { %p2154_p13 = scmp.ne.s32.totalorder %s2377_s4, %s2153_s6  ;;  %p2155_p0 = pneg %p2379_p10 }
  0x33   : > { %s2158_s9 = scalar_lea.hbm %s2680_s0, 32768  ;;  %p2159_p7 = scmp.lt.u32.totalorder %s2377_s4, %s2680_s0 }
  0x34   : > { %p2156_p3 = pnand %p2155_p0, %p2154_p13  ;;  %p2160_p9 = scmp.lt.u32.totalorder %s2158_s9, %s2153_s6 }
  0x35   : > { %p2162_p2 = scmp.lt.u32.totalorder %s2153_s6, %s2377_s4 }
  0x36   : > { %p2157_p5 = pneg %p2156_p3  ;;  %p2161_p11 = por %p2160_p9, %p2159_p7 }
  0x38   : > { %p2163_p1 = por %p2162_p2, %p2161_p11 }
  0x3a   : > { %p2164_p4 = pnand %p2163_p1, %p2157_p5 }
  0x3c   : > { %2167 = shalt.err (!%p2164_p4)
}
  0x3d   : > { %s2168_s27 = scalar_lea.vmem %s2383_s25, 8192  ;;  %s2258_s28 = smov [#allocation2]  }
  0x3e   : > { %p2169_p6 = scmp.ne.s32.totalorder %s2383_s25, %s2168_s27  ;;  %s2173_s29 = sshll.u32 %s2258_s28, 4  ;;  %s2174_s29 = int_to_ptr.vmem [resolvable:$false] %s2173_s29 }
  0x3f   : > { %s2175_s23 = scalar_lea.vmem %s2174_s29, 16384  ;;  %p2176_p3 = scmp.lt.s32.totalorder %s2383_s25, %s2174_s29 }
  0x40   : > { %p2171_p8 = pnand %p2169_p6, %p2155_p0  ;;  %p2177_p7 = scmp.lt.s32.totalorder %s2175_s23, %s2168_s27 }
  0x42   : > { %p2172_p13 = pneg %p2171_p8  ;;  %p2178_p9 = por %p2177_p7, %p2176_p3 }
  0x44   : > { %p2179_p11 = pnand %p2178_p9, %p2172_p13 }
  0x46   : > { %2182 = shalt.err (!%p2179_p11)
}
  0x47   : > { %s2259_s30 = smov 128   ;;  %s2260_s22 = smov 8  }
  0x48   : > { %1964 = dma.hbm_to_vmem [thread:$0]  (!%p2379_p10), %s2377_s4, 8192, %s2383_s25, %s2385_s5, %s2259_s30, %s2259_s30, %s2260_s22  }
  0x49   : > { %p2694_p0 = scmp.ne.s32.totalorder %s2689_s20, 0 }
  0x4a   : > { %s2416_s6 = sand.u32 (!%p2694_p0), 1, %s2245_s13   ;;  %p2695_p5 = scmp.ne.s32.totalorder (!%p2694_p0), %s2687_s18, 0 }
  0x4b   : > { %172 = sbr.rel (%p2694_p0) target bundleno = 506 (0x1fa), region = 32  ;;  %s1506_s7 = sshll.u32 (!%p2694_p0), %s2416_s6, 9 }
  0x4c   : > { %s175_s8 = scalar_lea.sflag (!%p2694_p0), [#allocation3], %s2416_s6  ;;  %s2420_s9 = scalar_lea.vmem (!%p2694_p0), [#allocation2], %s1506_s7 }
  0x52   : > { %2228 = dma.done.wait (%p2695_p5), %s175_s8, 8192  }
  0x53   : > { %2230 = vsyncadd (%p2695_p5), %s175_s8, 4294959104  ;;  %p2696_p10 = scmp.eq.s32.totalorder %s2306_s16, 0 }
  0x55   : > { %2232 = dma.done.wait (%p2696_p10), [#allocation6], 2048   ;;  %p2697_p2 = pmov %p2696_p10 }
  0x56   : > { %v2261_v0 = vmov 0   ;;  %v2013_v1 = vld [vmem:[#allocation5] sm:$0xff]   ;;  %v2014_v2 = vld [vmem:[#allocation5 + $0x8] sm:$0xff]   ;;  %v2015_v3 = vld [vmem:[#allocation5 + $0x10] sm:$0xff]   ;;  %s1508_s4 = sshll.u32 %s2416_s6, 8  ;;  %s1725_s26 = sshll.u32 %s2306_s16, 12 }
  0x57   : > { %2234 = vsyncadd (%p2697_p2), [#allocation6], 4294965248  ;;  %727 = vmatprep.subr.bf16.mxu0 %v2261_v0  ;;  %1917 = vmatprep.subr.bf16.mxu1 %v2261_v0  ;;  %v2016_v4 = vld [vmem:[#allocation5 + $0x18] sm:$0xff]   ;;  %v2017_v5 = vld [vmem:[#allocation5 + $0x20] sm:$0xff]   ;;  %s2536_s25 = scalar_lea.vmem [#allocation7], %s1508_s4  ;;  %s2633_s27 = scalar_lea.hbm %s2683_s3, %s1725_s26 }
  0x58   : > { %728 = vmatpush1.bf16.msra.mxu0 %v2013_v1  ;;  %1933 = vmatpush1.bf16.msra.mxu1 %v2013_v1  ;;  %v2031_v6 = vld [vmem:[%s2420_s9 + $0x4] ss:$8 sps:$4 sm:$0xff]   ;;  %v2019_v9 = vld [vmem:[#allocation5 + $0x30] sm:$0xff]   ;;  %v2020_v10 = vld [vmem:[#allocation5 + $0x38] sm:$0xff]   ;;  %s1414_s5 = sshll.u32 %s2536_s25, 4  ;;  %s1401_s16 = scalar_lea.sflag [#allocation4], %s2416_s6  ;;  %s2635_s5 = int_to_ptr.vmem [resolvable:$true] %s1414_s5 }
  0x59   : > { %729 = vmatprep.subr.bf16.mxu0 %v2261_v0  ;;  %1918 = vmatprep.subr.bf16.mxu1 %v2261_v0  ;;  %v2018_v7 = vld [vmem:[#allocation5 + $0x28] sm:$0xff]   ;;  %v2021_v11 = vld [vmem:[#allocation5 + $0x40] sm:$0xff]   ;;  %v2023_v13 = vld [vmem:[#allocation5 + $0x50] sm:$0xff]   ;;  %s2183_s28 = scalar_lea.vmem %s2635_s5, 4096  ;;  %s2262_s29 = smov [#allocation7]  }
  0x5a   : > { %v2034_v8 = vld [vmem:[%s2420_s9 + $0x104] ss:$8 sps:$4 sm:$0xff]   ;;  %759 = vmatprep.mubr.bf16.mxu0 %v2031_v6  ;;  %v2024_v14 = vld [vmem:[#allocation5 + $0x58] sm:$0xff]   ;;  %v2027_v17 = vld [vmem:[#allocation5 + $0x70] sm:$0xff]   ;;  %p2184_p1 = scmp.ne.s32.totalorder %s2635_s5, %s2183_s28  ;;  %s2187_s23 = sshll.u32 %s2262_s29, 4  ;;  %s2188_s23 = int_to_ptr.vmem [resolvable:$false] %s2187_s23 }
  0x5b   : > { %887 = vmatprep.mubr.bf16.mxu1 %v2034_v8  ;;  %v2022_v12 = vld [vmem:[#allocation5 + $0x48] sm:$0xff]   ;;  %v2025_v15 = vld [vmem:[#allocation5 + $0x60] sm:$0xff]   ;;  %v2028_v18 = vld [vmem:[#allocation5 + $0x78] sm:$0xff]   ;;  %s2189_s30 = scalar_lea.vmem %s2188_s23, 8192  ;;  %p2190_p8 = scmp.lt.s32.totalorder %s2635_s5, %s2188_s23 }
  0x5c   : > { %730 = vmatpush1.bf16.msra.mxu0 %v2014_v2  ;;  %1934 = vmatpush1.bf16.msra.mxu1 %v2014_v2  ;;  %v2026_v16 = vld [vmem:[#allocation5 + $0x68] sm:$0xff]   ;;  %v2035_v21 = vld [vmem:[%s2420_s9 + $0x14] ss:$8 sps:$4 sm:$0xff]   ;;  %v2039_v23 = vld [vmem:[%s2420_s9 + $0x10] ss:$8 sps:$4 sm:$0xff]   ;;  %p2185_p4 = pnand %p2184_p1, %p2368_p12  ;;  %p2191_p13 = scmp.lt.s32.totalorder %s2189_s30, %s2183_s28 }
  0x5d   : > { %731 = vmatprep.subr.bf16.mxu0 %v2261_v0  ;;  %1919 = vmatprep.subr.bf16.mxu1 %v2261_v0  ;;  %v2029_v19 = vld [vmem:[%s2420_s9] ss:$8 sps:$4 sm:$0xff]   ;;  %v2037_v22 = vld [vmem:[%s2420_s9 + $0x114] ss:$8 sps:$4 sm:$0xff]   ;;  %v2040_v24 = vld [vmem:[%s2420_s9 + $0x110] ss:$8 sps:$4 sm:$0xff]  }
  0x5e   : > { %v2032_v20 = vld [vmem:[%s2420_s9 + $0x100] ss:$8 sps:$4 sm:$0xff]   ;;  %v2041_v25 = vld [vmem:[%s2420_s9 + $0x24] ss:$8 sps:$4 sm:$0xff]   ;;  %v2047_v29 = vld [vmem:[%s2420_s9 + $0x34] ss:$8 sps:$4 sm:$0xff]   ;;  %p2186_p6 = pneg %p2185_p4  ;;  %p2192_p3 = por %p2191_p13, %p2190_p8 }
  0x5f   : > { %v2043_v26 = vld [vmem:[%s2420_s9 + $0x124] ss:$8 sps:$4 sm:$0xff]   ;;  %v2045_v27 = vld [vmem:[%s2420_s9 + $0x20] ss:$8 sps:$4 sm:$0xff]   ;;  %v2049_v30 = vld [vmem:[%s2420_s9 + $0x134] ss:$8 sps:$4 sm:$0xff]  }
  0x60   : > { %732 = vmatpush1.bf16.msra.mxu0 %v2015_v3  ;;  %1935 = vmatpush1.bf16.msra.mxu1 %v2015_v3  ;;  %v2046_v28 = vld [vmem:[%s2420_s9 + $0x120] ss:$8 sps:$4 sm:$0xff]   ;;  %v2051_v31 = vld [vmem:[%s2420_s9 + $0x30] ss:$8 sps:$4 sm:$0xff]   ;;  %v2053_v33 = vld [vmem:[%s2420_s9 + $0x44] ss:$8 sps:$4 sm:$0xff]   ;;  %p2193_p7 = pnand %p2192_p3, %p2186_p6 }
  0x61   : > { %733 = vmatprep.subr.bf16.mxu0 %v2261_v0  ;;  %1920 = vmatprep.subr.bf16.mxu1 %v2261_v0  ;;  %v2052_v32 = vld [vmem:[%s2420_s9 + $0x130] ss:$8 sps:$4 sm:$0xff]   ;;  %v2055_v34 = vld [vmem:[%s2420_s9 + $0x144] ss:$8 sps:$4 sm:$0xff]   ;;  %v2057_v35 = vld [vmem:[%s2420_s9 + $0x40] ss:$8 sps:$4 sm:$0xff]  }
  0x62   : > { %v2058_v36 = vld [vmem:[%s2420_s9 + $0x140] ss:$8 sps:$4 sm:$0xff]   ;;  %v2059_v37 = vld [vmem:[%s2420_s9 + $0x54] ss:$8 sps:$4 sm:$0xff]   ;;  %v2063_v39 = vld [vmem:[%s2420_s9 + $0x50] ss:$8 sps:$4 sm:$0xff]  }
  0x63   : > { %v2061_v38 = vld [vmem:[%s2420_s9 + $0x154] ss:$8 sps:$4 sm:$0xff]   ;;  %v2064_v40 = vld [vmem:[%s2420_s9 + $0x150] ss:$8 sps:$4 sm:$0xff]   ;;  %v2065_v41 = vld [vmem:[%s2420_s9 + $0x64] ss:$8 sps:$4 sm:$0xff]  }
  0x64   : > { %734 = vmatpush1.bf16.msra.mxu0 %v2016_v4  ;;  %1936 = vmatpush1.bf16.msra.mxu1 %v2016_v4  ;;  %v2067_v42 = vld [vmem:[%s2420_s9 + $0x164] ss:$8 sps:$4 sm:$0xff]   ;;  %v2069_v43 = vld [vmem:[%s2420_s9 + $0x60] ss:$8 sps:$4 sm:$0xff]   ;;  %v2071_v45 = vld [vmem:[%s2420_s9 + $0x74] ss:$8 sps:$4 sm:$0xff]  }
  0x65   : > { %735 = vmatprep.subr.bf16.mxu0 %v2261_v0  ;;  %1921 = vmatprep.subr.bf16.mxu1 %v2261_v0  ;;  %v2070_v44 = vld [vmem:[%s2420_s9 + $0x160] ss:$8 sps:$4 sm:$0xff]   ;;  %v2073_v46 = vld [vmem:[%s2420_s9 + $0x174] ss:$8 sps:$4 sm:$0xff]   ;;  %v2075_v47 = vld [vmem:[%s2420_s9 + $0x70] ss:$8 sps:$4 sm:$0xff]  }
  0x66   : > { %v2076_v48 = vld [vmem:[%s2420_s9 + $0x170] ss:$8 sps:$4 sm:$0xff]   ;;  %v2077_v49 = vld [vmem:[%s2420_s9 + $0x84] ss:$8 sps:$4 sm:$0xff]   ;;  %v2081_v51 = vld [vmem:[%s2420_s9 + $0x80] ss:$8 sps:$4 sm:$0xff]  }
  0x67   : > { %v2079_v50 = vld [vmem:[%s2420_s9 + $0x184] ss:$8 sps:$4 sm:$0xff]   ;;  %v2082_v52 = vld [vmem:[%s2420_s9 + $0x180] ss:$8 sps:$4 sm:$0xff]   ;;  %v2083_v53 = vld [vmem:[%s2420_s9 + $0x94] ss:$8 sps:$4 sm:$0xff]  }
  0x68   : > { %736 = vmatpush1.bf16.msra.mxu0 %v2017_v5  ;;  %1937 = vmatpush1.bf16.msra.mxu1 %v2017_v5  ;;  %v2085_v54 = vld [vmem:[%s2420_s9 + $0x194] ss:$8 sps:$4 sm:$0xff]   ;;  %v2087_v55 = vld [vmem:[%s2420_s9 + $0x90] ss:$8 sps:$4 sm:$0xff]   ;;  %v2089_v57 = vld [vmem:[%s2420_s9 + $0xa4] ss:$8 sps:$4 sm:$0xff]  }
  0x69   : > { %737 = vmatprep.subr.bf16.mxu0 %v2261_v0  ;;  %1922 = vmatprep.subr.bf16.mxu1 %v2261_v0  ;;  %v2088_v56 = vld [vmem:[%s2420_s9 + $0x190] ss:$8 sps:$4 sm:$0xff]   ;;  %v2091_v58 = vld [vmem:[%s2420_s9 + $0x1a4] ss:$8 sps:$4 sm:$0xff]   ;;  %v2093_v59 = vld [vmem:[%s2420_s9 + $0xa0] ss:$8 sps:$4 sm:$0xff]  }
  0x6a   : > { %v2094_v60 = vld [vmem:[%s2420_s9 + $0x1a0] ss:$8 sps:$4 sm:$0xff]   ;;  %v2095_v61 = vld [vmem:[%s2420_s9 + $0xb4] ss:$8 sps:$4 sm:$0xff]   ;;  %v2099_v63 = vld [vmem:[%s2420_s9 + $0xb0] ss:$8 sps:$4 sm:$0xff]  }
  0x6b   : > { %v2097_v62 = vld [vmem:[%s2420_s9 + $0x1b4] ss:$8 sps:$4 sm:$0xff]   ;;  %v2101_v1 = vld [vmem:[%s2420_s9 + $0xc4] ss:$8 sps:$4 sm:$0xff]   ;;  %v2105_v3 = vld [vmem:[%s2420_s9 + $0xc0] ss:$8 sps:$4 sm:$0xff]  }
  0x6c   : > { %738 = vmatpush1.bf16.msra.mxu0 %v2018_v7  ;;  %1938 = vmatpush1.bf16.msra.mxu1 %v2018_v7  ;;  %v2103_v2 = vld [vmem:[%s2420_s9 + $0x1c4] ss:$8 sps:$4 sm:$0xff]   ;;  %v2106_v4 = vld [vmem:[%s2420_s9 + $0x1c0] ss:$8 sps:$4 sm:$0xff]   ;;  %v2107_v5 = vld [vmem:[%s2420_s9 + $0xd4] ss:$8 sps:$4 sm:$0xff]  }
  0x6d   : > { %739 = vmatprep.subr.bf16.mxu0 %v2261_v0  ;;  %1923 = vmatprep.subr.bf16.mxu1 %v2261_v0  ;;  %v2109_v6 = vld [vmem:[%s2420_s9 + $0x1d4] ss:$8 sps:$4 sm:$0xff]   ;;  %v2111_v7 = vld [vmem:[%s2420_s9 + $0xd0] ss:$8 sps:$4 sm:$0xff]  }
  0x6e   : > { %v2112_v8 = vld [vmem:[%s2420_s9 + $0x1d0] ss:$8 sps:$4 sm:$0xff]  }
  0x70   : > { %740 = vmatpush1.bf16.msra.mxu0 %v2019_v9  ;;  %1939 = vmatpush1.bf16.msra.mxu1 %v2019_v9  ;;  %v2113_v9 = vld [vmem:[%s2420_s9 + $0xe4] ss:$8 sps:$4 sm:$0xff]  }
  0x71   : > { %741 = vmatprep.subr.bf16.mxu0 %v2261_v0  ;;  %1924 = vmatprep.subr.bf16.mxu1 %v2261_v0 }
  0x74   : > { %742 = vmatpush1.bf16.msra.mxu0 %v2020_v10  ;;  %1940 = vmatpush1.bf16.msra.mxu1 %v2020_v10  ;;  %v2115_v10 = vld [vmem:[%s2420_s9 + $0x1e4] ss:$8 sps:$4 sm:$0xff]  }
  0x75   : > { %743 = vmatprep.subr.bf16.mxu0 %v2261_v0  ;;  %1925 = vmatprep.subr.bf16.mxu1 %v2261_v0 }
  0x78   : > { %744 = vmatpush1.bf16.msra.mxu0 %v2021_v11  ;;  %1941 = vmatpush1.bf16.msra.mxu1 %v2021_v11  ;;  %v2117_v11 = vld [vmem:[%s2420_s9 + $0xe0] ss:$8 sps:$4 sm:$0xff]  }
  0x79   : > { %745 = vmatprep.subr.bf16.mxu0 %v2261_v0  ;;  %1926 = vmatprep.subr.bf16.mxu1 %v2261_v0 }
  0x7c   : > { %746 = vmatpush1.bf16.msra.mxu0 %v2022_v12  ;;  %1942 = vmatpush1.bf16.msra.mxu1 %v2022_v12  ;;  %v2118_v12 = vld [vmem:[%s2420_s9 + $0x1e0] ss:$8 sps:$4 sm:$0xff]  }
  0x7d   : > { %747 = vmatprep.subr.bf16.mxu0 %v2261_v0  ;;  %1927 = vmatprep.subr.bf16.mxu1 %v2261_v0 }
  0x80   : > { %748 = vmatpush1.bf16.msra.mxu0 %v2023_v13  ;;  %1943 = vmatpush1.bf16.msra.mxu1 %v2023_v13  ;;  %v2119_v13 = vld [vmem:[%s2420_s9 + $0xf4] ss:$8 sps:$4 sm:$0xff]  }
  0x81   : > { %749 = vmatprep.subr.bf16.mxu0 %v2261_v0  ;;  %1928 = vmatprep.subr.bf16.mxu1 %v2261_v0 }
  0x84   : > { %750 = vmatpush1.bf16.msra.mxu0 %v2024_v14  ;;  %1944 = vmatpush1.bf16.msra.mxu1 %v2024_v14  ;;  %v2121_v14 = vld [vmem:[%s2420_s9 + $0x1f4] ss:$8 sps:$4 sm:$0xff]  }
  0x85   : > { %751 = vmatprep.subr.bf16.mxu0 %v2261_v0  ;;  %1929 = vmatprep.subr.bf16.mxu1 %v2261_v0 }
  0x88   : > { %752 = vmatpush1.bf16.msra.mxu0 %v2025_v15  ;;  %1945 = vmatpush1.bf16.msra.mxu1 %v2025_v15  ;;  %v2123_v15 = vld [vmem:[%s2420_s9 + $0xf0] ss:$8 sps:$4 sm:$0xff]  }
  0x89   : > { %753 = vmatprep.subr.bf16.mxu0 %v2261_v0  ;;  %1930 = vmatprep.subr.bf16.mxu1 %v2261_v0 }
  0x8c   : > { %754 = vmatpush1.bf16.msra.mxu0 %v2026_v16  ;;  %1946 = vmatpush1.bf16.msra.mxu1 %v2026_v16  ;;  %v2124_v16 = vld [vmem:[%s2420_s9 + $0x1f0] ss:$8 sps:$4 sm:$0xff]  }
  0x8d   : > { %755 = vmatprep.subr.bf16.mxu0 %v2261_v0  ;;  %1931 = vmatprep.subr.bf16.mxu1 %v2261_v0 }
  0x90   : > { %756 = vmatpush1.bf16.msra.mxu0 %v2027_v17  ;;  %1947 = vmatpush1.bf16.msra.mxu1 %v2027_v17  ;;  %v2529_v17 = vld [vmem:[%s2682_s2] ss:$0 sm:$0xff] }
  0x91   : > { %757 = vmatprep.subr.bf16.mxu0 %v2261_v0  ;;  %1932 = vmatprep.subr.bf16.mxu1 %v2261_v0  ;;  %v2100_v0 = vld [vmem:[%s2420_s9 + $0x1b0] ss:$8 sps:$4 sm:$0xff]  }
  0x94   : > { %758 = vmatpush1.bf16.msra.mxu0 %v2028_v18  ;;  %1948 = vmatpush1.bf16.msra.mxu1 %v2028_v18 }
  0x97   : > { %760 = vmatmul.mubr.bf16.vlgmr.msra.gmra.mrb[0].mxu0 %v2029_v19  ;;  %888 = vmatmul.mubr.bf16.vlgmr.msra.gmra.mrb[0].mxu1 %v2032_v20 }
  0x98   : > { %767 = vmatprep.mubr.bf16.mxu0 %v2035_v21  ;;  %895 = vmatprep.mubr.bf16.mxu1 %v2037_v22 }
  0x9f   : > { %768 = vmatmul.mubr.bf16.gmra.mrb[4].mxu0 %v2039_v23  ;;  %896 = vmatmul.mubr.bf16.gmra.mrb[4].mxu1 %v2040_v24 }
  0xa0   : > { %775 = vmatprep.mubr.bf16.mxu0 %v2041_v25  ;;  %903 = vmatprep.mubr.bf16.mxu1 %v2043_v26 }
  0xa7   : > { %776 = vmatmul.mubr.bf16.gmra.mrb[8].mxu0 %v2045_v27  ;;  %904 = vmatmul.mubr.bf16.gmra.mrb[8].mxu1 %v2046_v28 }
  0xa8   : > { %783 = vmatprep.mubr.bf16.mxu0 %v2047_v29  ;;  %911 = vmatprep.mubr.bf16.mxu1 %v2049_v30 }
  0xaf   : > { %784 = vmatmul.mubr.bf16.gmra.mrb[12].mxu0 %v2051_v31  ;;  %912 = vmatmul.mubr.bf16.gmra.mrb[12].mxu1 %v2052_v32 }
  0xb0   : > { %791 = vmatprep.mubr.bf16.mxu0 %v2053_v33  ;;  %919 = vmatprep.mubr.bf16.mxu1 %v2055_v34 }
  0xb7   : > { %792 = vmatmul.mubr.bf16.gmra.mrb[16].mxu0 %v2057_v35  ;;  %920 = vmatmul.mubr.bf16.gmra.mrb[16].mxu1 %v2058_v36 }
  0xb8   : > { %799 = vmatprep.mubr.bf16.mxu0 %v2059_v37  ;;  %927 = vmatprep.mubr.bf16.mxu1 %v2061_v38 }
  0xbf   : > { %800 = vmatmul.mubr.bf16.gmra.mrb[20].mxu0 %v2063_v39  ;;  %928 = vmatmul.mubr.bf16.gmra.mrb[20].mxu1 %v2064_v40 }
  0xc0   : > { %807 = vmatprep.mubr.bf16.mxu0 %v2065_v41  ;;  %935 = vmatprep.mubr.bf16.mxu1 %v2067_v42 }
  0xc7   : > { %808 = vmatmul.mubr.bf16.gmra.mrb[24].mxu0 %v2069_v43  ;;  %936 = vmatmul.mubr.bf16.gmra.mrb[24].mxu1 %v2070_v44 }
  0xc8   : > { %815 = vmatprep.mubr.bf16.mxu0 %v2071_v45  ;;  %943 = vmatprep.mubr.bf16.mxu1 %v2073_v46 }
  0xcf   : > { %816 = vmatmul.mubr.bf16.gmra.mrb[28].mxu0 %v2075_v47  ;;  %944 = vmatmul.mubr.bf16.gmra.mrb[28].mxu1 %v2076_v48 }
  0xd0   : > { %823 = vmatprep.mubr.bf16.mxu0 %v2077_v49  ;;  %951 = vmatprep.mubr.bf16.mxu1 %v2079_v50 }
  0xd7   : > { %824 = vmatmul.mubr.bf16.gmra.mrb[32].mxu0 %v2081_v51  ;;  %952 = vmatmul.mubr.bf16.gmra.mrb[32].mxu1 %v2082_v52 }
  0xd8   : > { %831 = vmatprep.mubr.bf16.mxu0 %v2083_v53  ;;  %959 = vmatprep.mubr.bf16.mxu1 %v2085_v54 }
  0xdf   : > { %832 = vmatmul.mubr.bf16.gmra.mrb[36].mxu0 %v2087_v55  ;;  %960 = vmatmul.mubr.bf16.gmra.mrb[36].mxu1 %v2088_v56 }
  0xe0   : > { %839 = vmatprep.mubr.bf16.mxu0 %v2089_v57  ;;  %967 = vmatprep.mubr.bf16.mxu1 %v2091_v58 }
  0xe7   : > { %840 = vmatmul.mubr.bf16.gmra.mrb[40].mxu0 %v2093_v59  ;;  %968 = vmatmul.mubr.bf16.gmra.mrb[40].mxu1 %v2094_v60 }
  0xe8   : > { %847 = vmatprep.mubr.bf16.mxu0 %v2095_v61  ;;  %975 = vmatprep.mubr.bf16.mxu1 %v2097_v62 }
  0xef   : > { %848 = vmatmul.mubr.bf16.gmra.mrb[44].mxu0 %v2099_v63  ;;  %976 = vmatmul.mubr.bf16.gmra.mrb[44].mxu1 %v2100_v0 }
  0xf0   : > { %855 = vmatprep.mubr.bf16.mxu0 %v2101_v1  ;;  %983 = vmatprep.mubr.bf16.mxu1 %v2103_v2 }
  0xf7   : > { %856 = vmatmul.mubr.bf16.gmra.mrb[48].mxu0 %v2105_v3  ;;  %984 = vmatmul.mubr.bf16.gmra.mrb[48].mxu1 %v2106_v4 }
  0xf8   : > { %863 = vmatprep.mubr.bf16.mxu0 %v2107_v5  ;;  %991 = vmatprep.mubr.bf16.mxu1 %v2109_v6 }
  0xff   : > { %864 = vmatmul.mubr.bf16.gmra.mrb[52].mxu0 %v2111_v7  ;;  %992 = vmatmul.mubr.bf16.gmra.mrb[52].mxu1 %v2112_v8 }
 0x100   : > { %871 = vmatprep.mubr.bf16.mxu0 %v2113_v9  ;;  %999 = vmatprep.mubr.bf16.mxu1 %v2115_v10 }
 0x107   : > { %872 = vmatmul.mubr.bf16.gmra.mrb[56].mxu0 %v2117_v11  ;;  %1000 = vmatmul.mubr.bf16.gmra.mrb[56].mxu1 %v2118_v12 }
 0x108   : > { %879 = vmatprep.mubr.bf16.mxu0 %v2119_v13  ;;  %1007 = vmatprep.mubr.bf16.mxu1 %v2121_v14 }
 0x10f   : > { %880 = vmatmul.mubr.bf16.gmra.mrb[60].mxu0 %v2123_v15  ;;  %1008 = vmatmul.mubr.bf16.gmra.mrb[60].mxu1 %v2124_v16 }
 0x16a   : > { %v761_v18 = vpop.f32.mrb[0].mxu0  ;;  %v889_v19 = vpop.f32.mrb[0].mxu1 }
 0x16b   : > { %v762_v20 = vadd.f32 %v2529_v17, %v761_v18  ;;  %v890_v21 = vadd.f32 %v2529_v17, %v889_v19  ;;  %v763_v22 = vpop.f32.mrb[1].mxu0  ;;  %v891_v23 = vpop.f32.mrb[1].mxu1 }
 0x16c   : > { %v764_v24 = vpop.f32.mrb[2].mxu0  ;;  %v892_v25 = vpop.f32.mrb[2].mxu1 }
 0x16d   : > { %v765_v26 = vadd.f32 %v2529_v17, %v764_v24  ;;  %v893_v27 = vadd.f32 %v2529_v17, %v892_v25  ;;  %v766_v28 = vpop.f32.mrb[3].mxu0  ;;  %v894_v29 = vpop.f32.mrb[3].mxu1  ;;  %v1016_v30 = vmax.f32 %v762_v20, 0.0  ;;  %v1048_v31 = vmax.f32 %v890_v21, 0.0 }
 0x16f   : > { %v1017_v32 = vmax.f32 %v765_v26, 0.0  ;;  %v1049_v33 = vmax.f32 %v893_v27, 0.0 }
 0x171   : > { %v1729_v34 = vpack.c.bf16 %v1017_v32, %v1016_v30  ;;  %v1809_v35 = vpack.c.bf16 %v1049_v33, %v1048_v31 }
 0x172   : > { %v769_v36 = vpop.f32.mrb[4].mxu0  ;;  %v897_v37 = vpop.f32.mrb[4].mxu1 }
 0x173   : > { %1730 = vst [vmem:[%s2536_s25] sm:$0xff] %v1729_v34   ;;  %1901 = vst [vmem:[%s2536_s25 + $0x80] sm:$0xff] %v1809_v35   ;;  %v770_v38 = vadd.f32 %v2529_v17, %v769_v36  ;;  %v898_v39 = vadd.f32 %v2529_v17, %v897_v37  ;;  %v771_v40 = vpop.f32.mrb[5].mxu0  ;;  %v899_v41 = vpop.f32.mrb[5].mxu1 }
 0x174   : > { %v772_v42 = vpop.f32.mrb[6].mxu0  ;;  %v900_v43 = vpop.f32.mrb[6].mxu1 }
 0x175   : > { %v773_v44 = vadd.f32 %v2529_v17, %v772_v42  ;;  %v901_v45 = vadd.f32 %v2529_v17, %v900_v43  ;;  %v774_v46 = vpop.f32.mrb[7].mxu0  ;;  %v902_v47 = vpop.f32.mrb[7].mxu1  ;;  %v1018_v48 = vmax.f32 %v770_v38, 0.0  ;;  %v1050_v49 = vmax.f32 %v898_v39, 0.0 }
 0x177   : > { %v1019_v50 = vmax.f32 %v773_v44, 0.0  ;;  %v1051_v51 = vmax.f32 %v901_v45, 0.0 }
 0x179   : > { %v1734_v52 = vpack.c.bf16 %v1019_v50, %v1018_v48  ;;  %v1814_v53 = vpack.c.bf16 %v1051_v51, %v1050_v49 }
 0x17a   : > { %v777_v54 = vpop.f32.mrb[8].mxu0  ;;  %v905_v55 = vpop.f32.mrb[8].mxu1 }
 0x17b   : > { %1886 = vst [vmem:[%s2536_s25 + $0x8] sm:$0xff] %v1734_v52   ;;  %1902 = vst [vmem:[%s2536_s25 + $0x88] sm:$0xff] %v1814_v53   ;;  %v778_v56 = vadd.f32 %v2529_v17, %v777_v54  ;;  %v906_v57 = vadd.f32 %v2529_v17, %v905_v55  ;;  %v779_v58 = vpop.f32.mrb[9].mxu0  ;;  %v907_v59 = vpop.f32.mrb[9].mxu1 }
 0x17c   : > { %v780_v60 = vpop.f32.mrb[10].mxu0  ;;  %v908_v61 = vpop.f32.mrb[10].mxu1 }
 0x17d   : > { %v781_v62 = vadd.f32 %v2529_v17, %v780_v60  ;;  %v909_v63 = vadd.f32 %v2529_v17, %v908_v61  ;;  %v782_v0 = vpop.f32.mrb[11].mxu0  ;;  %v910_v1 = vpop.f32.mrb[11].mxu1  ;;  %v1020_v2 = vmax.f32 %v778_v56, 0.0  ;;  %v1052_v3 = vmax.f32 %v906_v57, 0.0 }
 0x17f   : > { %v1021_v4 = vmax.f32 %v781_v62, 0.0  ;;  %v1053_v5 = vmax.f32 %v909_v63, 0.0 }
 0x181   : > { %v1739_v6 = vpack.c.bf16 %v1021_v4, %v1020_v2  ;;  %v1819_v7 = vpack.c.bf16 %v1053_v5, %v1052_v3 }
 0x182   : > { %v785_v8 = vpop.f32.mrb[12].mxu0  ;;  %v913_v9 = vpop.f32.mrb[12].mxu1 }
 0x183   : > { %1887 = vst [vmem:[%s2536_s25 + $0x10] sm:$0xff] %v1739_v6   ;;  %1903 = vst [vmem:[%s2536_s25 + $0x90] sm:$0xff] %v1819_v7   ;;  %v786_v10 = vadd.f32 %v2529_v17, %v785_v8  ;;  %v914_v11 = vadd.f32 %v2529_v17, %v913_v9  ;;  %v787_v12 = vpop.f32.mrb[13].mxu0  ;;  %v915_v13 = vpop.f32.mrb[13].mxu1 }
 0x184   : > { %v788_v14 = vpop.f32.mrb[14].mxu0  ;;  %v916_v15 = vpop.f32.mrb[14].mxu1 }
 0x185   : > { %v789_v16 = vadd.f32 %v2529_v17, %v788_v14  ;;  %v917_v18 = vadd.f32 %v2529_v17, %v916_v15  ;;  %v790_v19 = vpop.f32.mrb[15].mxu0  ;;  %v918_v20 = vpop.f32.mrb[15].mxu1  ;;  %v1022_v21 = vmax.f32 %v786_v10, 0.0  ;;  %v1054_v22 = vmax.f32 %v914_v11, 0.0 }
 0x187   : > { %v1023_v23 = vmax.f32 %v789_v16, 0.0  ;;  %v1055_v24 = vmax.f32 %v917_v18, 0.0 }
 0x189   : > { %v1744_v25 = vpack.c.bf16 %v1023_v23, %v1022_v21  ;;  %v1824_v26 = vpack.c.bf16 %v1055_v24, %v1054_v22 }
 0x18a   : > { %v793_v27 = vpop.f32.mrb[16].mxu0  ;;  %v921_v28 = vpop.f32.mrb[16].mxu1 }
 0x18b   : > { %1888 = vst [vmem:[%s2536_s25 + $0x18] sm:$0xff] %v1744_v25   ;;  %1904 = vst [vmem:[%s2536_s25 + $0x98] sm:$0xff] %v1824_v26   ;;  %v794_v29 = vadd.f32 %v2529_v17, %v793_v27  ;;  %v922_v30 = vadd.f32 %v2529_v17, %v921_v28  ;;  %v795_v31 = vpop.f32.mrb[17].mxu0  ;;  %v923_v32 = vpop.f32.mrb[17].mxu1 }
 0x18c   : > { %v796_v33 = vpop.f32.mrb[18].mxu0  ;;  %v924_v34 = vpop.f32.mrb[18].mxu1 }
 0x18d   : > { %v797_v35 = vadd.f32 %v2529_v17, %v796_v33  ;;  %v925_v36 = vadd.f32 %v2529_v17, %v924_v34  ;;  %v798_v37 = vpop.f32.mrb[19].mxu0  ;;  %v926_v38 = vpop.f32.mrb[19].mxu1  ;;  %v1024_v39 = vmax.f32 %v794_v29, 0.0  ;;  %v1056_v40 = vmax.f32 %v922_v30, 0.0 }
 0x18f   : > { %v1025_v41 = vmax.f32 %v797_v35, 0.0  ;;  %v1057_v42 = vmax.f32 %v925_v36, 0.0 }
 0x191   : > { %v1749_v43 = vpack.c.bf16 %v1025_v41, %v1024_v39  ;;  %v1829_v44 = vpack.c.bf16 %v1057_v42, %v1056_v40 }
 0x192   : > { %v801_v45 = vpop.f32.mrb[20].mxu0  ;;  %v929_v46 = vpop.f32.mrb[20].mxu1 }
 0x193   : > { %1889 = vst [vmem:[%s2536_s25 + $0x20] sm:$0xff] %v1749_v43   ;;  %1905 = vst [vmem:[%s2536_s25 + $0xa0] sm:$0xff] %v1829_v44   ;;  %v802_v47 = vadd.f32 %v2529_v17, %v801_v45  ;;  %v930_v48 = vadd.f32 %v2529_v17, %v929_v46  ;;  %v803_v49 = vpop.f32.mrb[21].mxu0  ;;  %v931_v50 = vpop.f32.mrb[21].mxu1 }
 0x194   : > { %v804_v51 = vpop.f32.mrb[22].mxu0  ;;  %v932_v52 = vpop.f32.mrb[22].mxu1 }
 0x195   : > { %v805_v53 = vadd.f32 %v2529_v17, %v804_v51  ;;  %v933_v54 = vadd.f32 %v2529_v17, %v932_v52  ;;  %v806_v55 = vpop.f32.mrb[23].mxu0  ;;  %v934_v56 = vpop.f32.mrb[23].mxu1  ;;  %v1026_v57 = vmax.f32 %v802_v47, 0.0  ;;  %v1058_v58 = vmax.f32 %v930_v48, 0.0 }
 0x197   : > { %v1027_v59 = vmax.f32 %v805_v53, 0.0  ;;  %v1059_v60 = vmax.f32 %v933_v54, 0.0 }
 0x199   : > { %v1754_v61 = vpack.c.bf16 %v1027_v59, %v1026_v57  ;;  %v1834_v62 = vpack.c.bf16 %v1059_v60, %v1058_v58 }
 0x19a   : > { %v809_v63 = vpop.f32.mrb[24].mxu0  ;;  %v937_v0 = vpop.f32.mrb[24].mxu1 }
 0x19b   : > { %1890 = vst [vmem:[%s2536_s25 + $0x28] sm:$0xff] %v1754_v61   ;;  %1906 = vst [vmem:[%s2536_s25 + $0xa8] sm:$0xff] %v1834_v62   ;;  %v810_v1 = vadd.f32 %v2529_v17, %v809_v63  ;;  %v938_v2 = vadd.f32 %v2529_v17, %v937_v0  ;;  %v811_v3 = vpop.f32.mrb[25].mxu0  ;;  %v939_v4 = vpop.f32.mrb[25].mxu1 }
 0x19c   : > { %v812_v5 = vpop.f32.mrb[26].mxu0  ;;  %v940_v6 = vpop.f32.mrb[26].mxu1 }
 0x19d   : > { %v813_v7 = vadd.f32 %v2529_v17, %v812_v5  ;;  %v941_v8 = vadd.f32 %v2529_v17, %v940_v6  ;;  %v814_v9 = vpop.f32.mrb[27].mxu0  ;;  %v942_v10 = vpop.f32.mrb[27].mxu1  ;;  %v1028_v11 = vmax.f32 %v810_v1, 0.0  ;;  %v1060_v12 = vmax.f32 %v938_v2, 0.0 }
 0x19f   : > { %v1029_v13 = vmax.f32 %v813_v7, 0.0  ;;  %v1061_v14 = vmax.f32 %v941_v8, 0.0 }
 0x1a1   : > { %v1759_v15 = vpack.c.bf16 %v1029_v13, %v1028_v11  ;;  %v1839_v16 = vpack.c.bf16 %v1061_v14, %v1060_v12 }
 0x1a2   : > { %v817_v18 = vpop.f32.mrb[28].mxu0  ;;  %v945_v19 = vpop.f32.mrb[28].mxu1 }
 0x1a3   : > { %1891 = vst [vmem:[%s2536_s25 + $0x30] sm:$0xff] %v1759_v15   ;;  %1907 = vst [vmem:[%s2536_s25 + $0xb0] sm:$0xff] %v1839_v16   ;;  %v818_v20 = vadd.f32 %v2529_v17, %v817_v18  ;;  %v946_v21 = vadd.f32 %v2529_v17, %v945_v19  ;;  %v819_v22 = vpop.f32.mrb[29].mxu0  ;;  %v947_v23 = vpop.f32.mrb[29].mxu1 }
 0x1a4   : > { %v820_v24 = vpop.f32.mrb[30].mxu0  ;;  %v948_v25 = vpop.f32.mrb[30].mxu1 }
 0x1a5   : > { %v821_v26 = vadd.f32 %v2529_v17, %v820_v24  ;;  %v949_v27 = vadd.f32 %v2529_v17, %v948_v25  ;;  %v822_v28 = vpop.f32.mrb[31].mxu0  ;;  %v950_v29 = vpop.f32.mrb[31].mxu1  ;;  %v1030_v30 = vmax.f32 %v818_v20, 0.0  ;;  %v1062_v31 = vmax.f32 %v946_v21, 0.0 }
 0x1a7   : > { %v1031_v32 = vmax.f32 %v821_v26, 0.0  ;;  %v1063_v33 = vmax.f32 %v949_v27, 0.0 }
 0x1a9   : > { %v1764_v34 = vpack.c.bf16 %v1031_v32, %v1030_v30  ;;  %v1844_v35 = vpack.c.bf16 %v1063_v33, %v1062_v31 }
 0x1aa   : > { %v825_v36 = vpop.f32.mrb[32].mxu0  ;;  %v953_v37 = vpop.f32.mrb[32].mxu1 }
 0x1ab   : > { %1892 = vst [vmem:[%s2536_s25 + $0x38] sm:$0xff] %v1764_v34   ;;  %1908 = vst [vmem:[%s2536_s25 + $0xb8] sm:$0xff] %v1844_v35   ;;  %v826_v38 = vadd.f32 %v2529_v17, %v825_v36  ;;  %v954_v39 = vadd.f32 %v2529_v17, %v953_v37  ;;  %v827_v40 = vpop.f32.mrb[33].mxu0  ;;  %v955_v41 = vpop.f32.mrb[33].mxu1 }
 0x1ac   : > { %v828_v42 = vpop.f32.mrb[34].mxu0  ;;  %v956_v43 = vpop.f32.mrb[34].mxu1 }
 0x1ad   : > { %v829_v44 = vadd.f32 %v2529_v17, %v828_v42  ;;  %v957_v45 = vadd.f32 %v2529_v17, %v956_v43  ;;  %v830_v46 = vpop.f32.mrb[35].mxu0  ;;  %v958_v47 = vpop.f32.mrb[35].mxu1  ;;  %v1032_v48 = vmax.f32 %v826_v38, 0.0  ;;  %v1064_v49 = vmax.f32 %v954_v39, 0.0 }
 0x1af   : > { %v1033_v50 = vmax.f32 %v829_v44, 0.0  ;;  %v1065_v51 = vmax.f32 %v957_v45, 0.0 }
 0x1b1   : > { %v1769_v52 = vpack.c.bf16 %v1033_v50, %v1032_v48  ;;  %v1849_v53 = vpack.c.bf16 %v1065_v51, %v1064_v49 }
 0x1b2   : > { %v833_v54 = vpop.f32.mrb[36].mxu0  ;;  %v961_v55 = vpop.f32.mrb[36].mxu1 }
 0x1b3   : > { %1893 = vst [vmem:[%s2536_s25 + $0x40] sm:$0xff] %v1769_v52   ;;  %1909 = vst [vmem:[%s2536_s25 + $0xc0] sm:$0xff] %v1849_v53   ;;  %v834_v56 = vadd.f32 %v2529_v17, %v833_v54  ;;  %v962_v57 = vadd.f32 %v2529_v17, %v961_v55  ;;  %v835_v58 = vpop.f32.mrb[37].mxu0  ;;  %v963_v59 = vpop.f32.mrb[37].mxu1 }
 0x1b4   : > { %v836_v60 = vpop.f32.mrb[38].mxu0  ;;  %v964_v61 = vpop.f32.mrb[38].mxu1 }
 0x1b5   : > { %v837_v62 = vadd.f32 %v2529_v17, %v836_v60  ;;  %v965_v63 = vadd.f32 %v2529_v17, %v964_v61  ;;  %v838_v0 = vpop.f32.mrb[39].mxu0  ;;  %v966_v1 = vpop.f32.mrb[39].mxu1  ;;  %v1034_v2 = vmax.f32 %v834_v56, 0.0  ;;  %v1066_v3 = vmax.f32 %v962_v57, 0.0 }
 0x1b7   : > { %v1035_v4 = vmax.f32 %v837_v62, 0.0  ;;  %v1067_v5 = vmax.f32 %v965_v63, 0.0 }
 0x1b9   : > { %v1774_v6 = vpack.c.bf16 %v1035_v4, %v1034_v2  ;;  %v1854_v7 = vpack.c.bf16 %v1067_v5, %v1066_v3 }
 0x1ba   : > { %v841_v8 = vpop.f32.mrb[40].mxu0  ;;  %v969_v9 = vpop.f32.mrb[40].mxu1 }
 0x1bb   : > { %1894 = vst [vmem:[%s2536_s25 + $0x48] sm:$0xff] %v1774_v6   ;;  %1910 = vst [vmem:[%s2536_s25 + $0xc8] sm:$0xff] %v1854_v7   ;;  %v842_v10 = vadd.f32 %v2529_v17, %v841_v8  ;;  %v970_v11 = vadd.f32 %v2529_v17, %v969_v9  ;;  %v843_v12 = vpop.f32.mrb[41].mxu0  ;;  %v971_v13 = vpop.f32.mrb[41].mxu1 }
 0x1bc   : > { %v844_v14 = vpop.f32.mrb[42].mxu0  ;;  %v972_v15 = vpop.f32.mrb[42].mxu1 }
 0x1bd   : > { %v845_v16 = vadd.f32 %v2529_v17, %v844_v14  ;;  %v973_v18 = vadd.f32 %v2529_v17, %v972_v15  ;;  %v846_v19 = vpop.f32.mrb[43].mxu0  ;;  %v974_v20 = vpop.f32.mrb[43].mxu1  ;;  %v1036_v21 = vmax.f32 %v842_v10, 0.0  ;;  %v1068_v22 = vmax.f32 %v970_v11, 0.0 }
 0x1bf   : > { %v1037_v23 = vmax.f32 %v845_v16, 0.0  ;;  %v1069_v24 = vmax.f32 %v973_v18, 0.0 }
 0x1c1   : > { %v1779_v25 = vpack.c.bf16 %v1037_v23, %v1036_v21  ;;  %v1859_v26 = vpack.c.bf16 %v1069_v24, %v1068_v22 }
 0x1c2   : > { %v849_v27 = vpop.f32.mrb[44].mxu0  ;;  %v977_v28 = vpop.f32.mrb[44].mxu1 }
 0x1c3   : > { %1895 = vst [vmem:[%s2536_s25 + $0x50] sm:$0xff] %v1779_v25   ;;  %1911 = vst [vmem:[%s2536_s25 + $0xd0] sm:$0xff] %v1859_v26   ;;  %v850_v29 = vadd.f32 %v2529_v17, %v849_v27  ;;  %v978_v30 = vadd.f32 %v2529_v17, %v977_v28  ;;  %v851_v31 = vpop.f32.mrb[45].mxu0  ;;  %v979_v32 = vpop.f32.mrb[45].mxu1 }
 0x1c4   : > { %v852_v33 = vpop.f32.mrb[46].mxu0  ;;  %v980_v34 = vpop.f32.mrb[46].mxu1 }
 0x1c5   : > { %v853_v35 = vadd.f32 %v2529_v17, %v852_v33  ;;  %v981_v36 = vadd.f32 %v2529_v17, %v980_v34  ;;  %v854_v37 = vpop.f32.mrb[47].mxu0  ;;  %v982_v38 = vpop.f32.mrb[47].mxu1  ;;  %v1038_v39 = vmax.f32 %v850_v29, 0.0  ;;  %v1070_v40 = vmax.f32 %v978_v30, 0.0 }
 0x1c7   : > { %v1039_v41 = vmax.f32 %v853_v35, 0.0  ;;  %v1071_v42 = vmax.f32 %v981_v36, 0.0 }
 0x1c9   : > { %v1784_v43 = vpack.c.bf16 %v1039_v41, %v1038_v39  ;;  %v1864_v44 = vpack.c.bf16 %v1071_v42, %v1070_v40 }
 0x1ca   : > { %v857_v45 = vpop.f32.mrb[48].mxu0  ;;  %v985_v46 = vpop.f32.mrb[48].mxu1 }
 0x1cb   : > { %1896 = vst [vmem:[%s2536_s25 + $0x58] sm:$0xff] %v1784_v43   ;;  %1912 = vst [vmem:[%s2536_s25 + $0xd8] sm:$0xff] %v1864_v44   ;;  %v858_v47 = vadd.f32 %v2529_v17, %v857_v45  ;;  %v986_v48 = vadd.f32 %v2529_v17, %v985_v46  ;;  %v859_v49 = vpop.f32.mrb[49].mxu0  ;;  %v987_v50 = vpop.f32.mrb[49].mxu1 }
 0x1cc   : > { %v860_v51 = vpop.f32.mrb[50].mxu0  ;;  %v988_v52 = vpop.f32.mrb[50].mxu1 }
 0x1cd   : > { %v861_v53 = vadd.f32 %v2529_v17, %v860_v51  ;;  %v989_v54 = vadd.f32 %v2529_v17, %v988_v52  ;;  %v862_v55 = vpop.f32.mrb[51].mxu0  ;;  %v990_v56 = vpop.f32.mrb[51].mxu1  ;;  %v1040_v57 = vmax.f32 %v858_v47, 0.0  ;;  %v1072_v58 = vmax.f32 %v986_v48, 0.0 }
 0x1cf   : > { %v1041_v59 = vmax.f32 %v861_v53, 0.0  ;;  %v1073_v60 = vmax.f32 %v989_v54, 0.0 }
 0x1d1   : > { %v1789_v61 = vpack.c.bf16 %v1041_v59, %v1040_v57  ;;  %v1869_v62 = vpack.c.bf16 %v1073_v60, %v1072_v58 }
 0x1d2   : > { %v865_v63 = vpop.f32.mrb[52].mxu0  ;;  %v993_v0 = vpop.f32.mrb[52].mxu1 }
 0x1d3   : > { %1897 = vst [vmem:[%s2536_s25 + $0x60] sm:$0xff] %v1789_v61   ;;  %1913 = vst [vmem:[%s2536_s25 + $0xe0] sm:$0xff] %v1869_v62   ;;  %v866_v1 = vadd.f32 %v2529_v17, %v865_v63  ;;  %v994_v2 = vadd.f32 %v2529_v17, %v993_v0  ;;  %v867_v3 = vpop.f32.mrb[53].mxu0  ;;  %v995_v4 = vpop.f32.mrb[53].mxu1 }
 0x1d4   : > { %v868_v5 = vpop.f32.mrb[54].mxu0  ;;  %v996_v6 = vpop.f32.mrb[54].mxu1 }
 0x1d5   : > { %v869_v7 = vadd.f32 %v2529_v17, %v868_v5  ;;  %v997_v8 = vadd.f32 %v2529_v17, %v996_v6  ;;  %v870_v9 = vpop.f32.mrb[55].mxu0  ;;  %v998_v10 = vpop.f32.mrb[55].mxu1  ;;  %v1042_v11 = vmax.f32 %v866_v1, 0.0  ;;  %v1074_v12 = vmax.f32 %v994_v2, 0.0 }
 0x1d7   : > { %v1043_v13 = vmax.f32 %v869_v7, 0.0  ;;  %v1075_v14 = vmax.f32 %v997_v8, 0.0 }
 0x1d9   : > { %v1794_v15 = vpack.c.bf16 %v1043_v13, %v1042_v11  ;;  %v1874_v16 = vpack.c.bf16 %v1075_v14, %v1074_v12 }
 0x1da   : > { %v873_v18 = vpop.f32.mrb[56].mxu0  ;;  %v1001_v19 = vpop.f32.mrb[56].mxu1 }
 0x1db   : > { %1898 = vst [vmem:[%s2536_s25 + $0x68] sm:$0xff] %v1794_v15   ;;  %1914 = vst [vmem:[%s2536_s25 + $0xe8] sm:$0xff] %v1874_v16   ;;  %v874_v20 = vadd.f32 %v2529_v17, %v873_v18  ;;  %v1002_v21 = vadd.f32 %v2529_v17, %v1001_v19  ;;  %v875_v22 = vpop.f32.mrb[57].mxu0  ;;  %v1003_v23 = vpop.f32.mrb[57].mxu1 }
 0x1dc   : > { %v876_v24 = vpop.f32.mrb[58].mxu0  ;;  %v1004_v25 = vpop.f32.mrb[58].mxu1 }
 0x1dd   : > { %v877_v26 = vadd.f32 %v2529_v17, %v876_v24  ;;  %v1005_v27 = vadd.f32 %v2529_v17, %v1004_v25  ;;  %v878_v28 = vpop.f32.mrb[59].mxu0  ;;  %v1006_v29 = vpop.f32.mrb[59].mxu1  ;;  %v1044_v30 = vmax.f32 %v874_v20, 0.0  ;;  %v1076_v31 = vmax.f32 %v1002_v21, 0.0 }
 0x1df   : > { %v1045_v32 = vmax.f32 %v877_v26, 0.0  ;;  %v1077_v33 = vmax.f32 %v1005_v27, 0.0 }
 0x1e1   : > { %v1799_v34 = vpack.c.bf16 %v1045_v32, %v1044_v30  ;;  %v1879_v35 = vpack.c.bf16 %v1077_v33, %v1076_v31 }
 0x1e2   : > { %v881_v36 = vpop.f32.mrb[60].mxu0  ;;  %v1009_v37 = vpop.f32.mrb[60].mxu1 }
 0x1e3   : > { %1899 = vst [vmem:[%s2536_s25 + $0x70] sm:$0xff] %v1799_v34   ;;  %1915 = vst [vmem:[%s2536_s25 + $0xf0] sm:$0xff] %v1879_v35   ;;  %v882_v38 = vadd.f32 %v2529_v17, %v881_v36  ;;  %v1010_v39 = vadd.f32 %v2529_v17, %v1009_v37  ;;  %v883_v40 = vpop.f32.mrb[61].mxu0  ;;  %v1011_v41 = vpop.f32.mrb[61].mxu1 }
 0x1e4   : > { %v884_v42 = vpop.f32.mrb[62].mxu0  ;;  %v1012_v43 = vpop.f32.mrb[62].mxu1 }
 0x1e5   : > { %v885_v44 = vadd.f32 %v2529_v17, %v884_v42  ;;  %v1013_v45 = vadd.f32 %v2529_v17, %v1012_v43  ;;  %v886_v46 = vpop.f32.mrb[63].mxu0  ;;  %v1014_v47 = vpop.f32.mrb[63].mxu1  ;;  %v1046_v48 = vmax.f32 %v882_v38, 0.0  ;;  %v1078_v49 = vmax.f32 %v1010_v39, 0.0 }
 0x1e7   : > { %v1047_v50 = vmax.f32 %v885_v44, 0.0  ;;  %v1079_v51 = vmax.f32 %v1013_v45, 0.0 }
 0x1e9   : > { %v1804_v17 = vpack.c.bf16 %v1047_v50, %v1046_v48  ;;  %v1884_v52 = vpack.c.bf16 %v1079_v51, %v1078_v49 }
 0x1eb   : > { %1900 = vst [vmem:[%s2536_s25 + $0x78] sm:$0xff] %v1804_v17   ;;  %1916 = vst [vmem:[%s2536_s25 + $0xf8] sm:$0xff] %v1884_v52  }
 0x1ec   : > { %2196 = shalt.err (!%p2193_p7)
}
 0x1ed   : > { %s2197_s22 = scalar_lea.hbm %s2633_s27, 4096  ;;  %s2201_s9 = scalar_lea.hbm %s2683_s3, 16384 }
 0x1ee   : > { %p2198_p9 = scmp.ne.s32.totalorder %s2633_s27, %s2197_s22  ;;  %p2202_p5 = scmp.lt.u32.totalorder %s2633_s27, %s2683_s3 }
 0x1ef   : > { %p2203_p10 = scmp.lt.u32.totalorder %s2201_s9, %s2197_s22  ;;  %p2205_p1 = scmp.lt.u32.totalorder %s2197_s22, %s2633_s27 }
 0x1f0   : > { %p2199_p11 = pnand %p2198_p9, %p2368_p12 }
 0x1f1   : > { %p2204_p2 = por %p2203_p10, %p2202_p5 }
 0x1f2   : > { %p2200_p0 = pneg %p2199_p11 }
 0x1f3   : > { %p2206_p4 = por %p2205_p1, %p2204_p2 }
 0x1f5   : > { %p2207_p6 = pnand %p2206_p4, %p2200_p0 }
 0x1f7   : > { %2210 = shalt.err (!%p2207_p6)
}
 0x1f8   : > { %s2263_s4 = smov 64   ;;  %s2264_s25 = smov 4  }
 0x1f9   : > { %1955 = dma.vmem_to_hbm [thread:$0]  (%p2368_p12), %s2635_s5, 4096, %s2633_s27, %s1401_s16, %s2263_s4, %s2263_s4, %s2264_s25  }
 0x1fa PF: > { %p1972_p8 = scmp.ge.s32.totalorder %s2253_s15, 2  ;;  %s1429_s26 = sand.u32 1, %s2241_s12  }
 0x1fb   : > { %p2698_p13 = scmp.ne.s32.totalorder %s2688_s19, 0  ;;  %s1430_s10 = scalar_lea.sflag [#allocation4], %s1429_s26 }
 0x1fd   : > { %p1966_p3 = pnand %p1972_p8, %p2698_p13 }
 0x1ff   : > { %2236 = dma.done.wait (!%p1966_p3), %s1430_s10, 4096  }
 0x200   : > { %2238 = vsyncadd (!%p1966_p3), %s1430_s10, 4294963200  ;;  %p17_p7 = scmp.ge.s32.totalorder %s2338_s24, 6   ;;  %s2699_s12 = smov %s2245_s13 }
 0x201   : > { %s2700_s13 = smov %s2249_s14  ;;  %s2701_s14 = smov %s2364_s17 }
 0x202   : > { %s2702_s15 = smov %s2338_s24  ;;  %19 = sbr.rel (!%p17_p7) target bundleno = 6 (0x6), region = 81 }
 0x209   :  { %1435 = vsyncpa [#allocation3], 1 }
 0x20a   :  { %1437 = vsyncpa [#allocation3 + $0x1], 1 }
 0x20b   :  { %1438 = vsyncpa [#allocation6], 1 }
 0x20c   :  { %1439 = vsyncpa [#allocation4], 1 }
 0x20d   :  { %1441 = vsyncpa [#allocation4 + $0x1], 1 }

</bundles_post_ra>
